<compile_context>
chip_gen: v7x
topology: tpu7x:2x2x1
jax: 0.10.0
libtpu: 0.0.40
codegen_flags: <defaults>
</compile_context>

<pallas_src>
import functools

import jax
import jax.numpy as jnp
from jax.experimental import pallas as pl
from jax.experimental.pallas import tpu as pltpu

LATENT_DIM = 32
HIDDEN = 512
OUT_DIM = 256
BN_EPS = 1e-5
NEG_SLOPE = 0.2
MAX_TILE_B = 512           # batch tile cap: MXU M-fill friendly, bounded for VMEM
VMEM_LIMIT = 16 << 20      # explicit budget; headroom even on v7x (64 MiB phys / 32 scoped)


def _round_up(x, m):
    return (x + m - 1) // m * m


def _leaky_relu(x):
    # slope < 1  =>  leaky_relu(x) == max(x, slope * x)   (mul+max, no cmp/select)
    return jnp.maximum(x, NEG_SLOPE * x)


# ----------------------------------------------------------------------------
# Fused single-tile path: the whole forward in one kernel, nothing but the
# final (Bp, 256) output ever touches HBM.
# ----------------------------------------------------------------------------
def _fused_kernel(z_ref, w1_ref, b1_ref, w2_ref, gamma_ref, beta_ref,
                  w3_ref, b3_ref, out_ref, *, batch, masked):
    h1 = jnp.dot(z_ref[...].astype(jnp.bfloat16), w1_ref[...],
                 preferred_element_type=jnp.float32) + b1_ref[...]
    h1 = _leaky_relu(h1)

    # Linear(512,512) bias omitted: no-op before training-mode BatchNorm.
    h2 = jnp.dot(h1.astype(jnp.bfloat16), w2_ref[...],
                 preferred_element_type=jnp.float32)

    inv_b = jnp.float32(1.0 / batch)
    if masked:
        valid = jax.lax.broadcasted_iota(jnp.int32, h2.shape, 0) < batch
        h2m = jnp.where(valid, h2, 0.0)
    else:
        h2m = h2
    mean = jnp.sum(h2m, axis=0, keepdims=True) * inv_b        # (1, HIDDEN)

    # Centered (two-pass) variance: h2 is resident in VMEM, so this is cheap
    # and numerically safe.
    h2c = h2 - mean
    if masked:
        h2cm = jnp.where(valid, h2c, 0.0)
    else:
        h2cm = h2c
    var = jnp.sum(h2cm * h2cm, axis=0, keepdims=True) * inv_b
    inv_std = jax.lax.rsqrt(var + BN_EPS)

    h2n = h2c * (gamma_ref[...] * inv_std) + beta_ref[...]
    h2a = _leaky_relu(h2n)

    h3 = jnp.dot(h2a.astype(jnp.bfloat16), w3_ref[...],
                 preferred_element_type=jnp.float32) + b3_ref[...]
    out_ref[...] = jnp.tanh(h3).astype(out_ref.dtype)


# ----------------------------------------------------------------------------
# Multi-tile path, stage 1: L1 + LeakyReLU + L2 (no bias), bf16 h2 out,
# masked partial (sum, sumsq) BN stats as two lane-dense outputs.
# ----------------------------------------------------------------------------
def _stage1_kernel(z_ref, w1_ref, b1_ref, w2_ref,
                   h2_ref, psum_ref, psumsq_ref, *, batch, tile_b, masked):
    i = pl.program_id(0)

    h1 = jnp.dot(z_ref[...].astype(jnp.bfloat16), w1_ref[...],
                 preferred_element_type=jnp.float32) + b1_ref[...]
    h1 = _leaky_relu(h1)

    h2 = jnp.dot(h1.astype(jnp.bfloat16), w2_ref[...],
                 preferred_element_type=jnp.float32)

    # Stats from the f32 accumulator (before the bf16 downcast), padded rows
    # masked out.
    if masked:
        row = jax.lax.broadcasted_iota(jnp.int32, h2.shape, 0) + i * tile_b
        h2v = jnp.where(row < batch, h2, 0.0)
    else:
        h2v = h2
    psum_ref[0] = jnp.sum(h2v, axis=0, keepdims=True)          # (1, HIDDEN)
    psumsq_ref[0] = jnp.sum(h2v * h2v, axis=0, keepdims=True)  # (1, HIDDEN)

    # bf16 h2: halves the dominant HBM write + re-read.
    h2_ref[...] = h2.astype(jnp.bfloat16)


# ----------------------------------------------------------------------------
# Multi-tile path, stage 2: in-kernel stats reduce + gamma/beta fold, then
# BN affine -> LeakyReLU -> L3 -> Tanh.
# ----------------------------------------------------------------------------
def _stage2_kernel(h2_ref, psum_ref, psumsq_ref, gamma_ref, beta_ref,
                   w3_ref, b3_ref, out_ref, *, batch):
    inv_b = jnp.float32(1.0 / batch)
    tot = jnp.sum(psum_ref[...], axis=0) * inv_b               # (1, HIDDEN) mean
    totsq = jnp.sum(psumsq_ref[...], axis=0) * inv_b           # (1, HIDDEN) E[x^2]
    var = jnp.maximum(totsq - tot * tot, 0.0)                  # biased batch var
    inv_std = jax.lax.rsqrt(var + BN_EPS)                      # EUP, ~free
    scale = gamma_ref[...] * inv_std
    shift = beta_ref[...] - tot * scale

    h2 = h2_ref[...].astype(jnp.float32)
    h2a = _leaky_relu(h2 * scale + shift)
    h3 = jnp.dot(h2a.astype(jnp.bfloat16), w3_ref[...],
                 preferred_element_type=jnp.float32) + b3_ref[...]
    out_ref[...] = jnp.tanh(h3).astype(out_ref.dtype)


def decoder_forward(z, params):
    # b2 unused: mathematically cancelled by training-mode BatchNorm.
    w1, b1, w2, _b2, gamma, beta, w3, b3 = params
    B = z.shape[0]

    const2 = lambda a: pl.BlockSpec(a.shape, lambda i: (0, 0))
    const3 = lambda a: pl.BlockSpec(a.shape, lambda i: (0, 0, 0))

    # -------------------- fused single-tile fast path ------------------------
    if B <= MAX_TILE_B:
        Bp = _round_up(B, 8)
        zp = jnp.pad(z, ((0, Bp - B), (0, 0))) if Bp != B else z
        out = pl.pallas_call(
            functools.partial(_fused_kernel, batch=B, masked=(Bp != B)),
            out_shape=jax.ShapeDtypeStruct((Bp, OUT_DIM), jnp.float32),
            grid_spec=pltpu.PrefetchScalarGridSpec(
                num_scalar_prefetch=0,
                grid=(1,),
                in_specs=[pl.BlockSpec((Bp, LATENT_DIM), lambda i: (0, 0)),
                          const2(w1), const2(b1), const2(w2),
                          const2(gamma), const2(beta),
                          const2(w3), const2(b3)],
                out_specs=pl.BlockSpec((Bp, OUT_DIM), lambda i: (0, 0))),
            compiler_params=pltpu.CompilerParams(
                dimension_semantics=("arbitrary",),
                vmem_limit_bytes=VMEM_LIMIT),
        )(zp, w1, b1, w2, gamma, beta, w3, b3)
        return out[:B] if Bp != B else out

    # -------------------- multi-tile path ------------------------------------
    # Even tile count so the "parallel" batch axis shards across both v7x TCs;
    # tile_b multiple of 128 (satisfies the bf16 (16,128) h2 block rule and
    # keeps decent MXU M-fill) and <= MAX_TILE_B.
    num_tiles = pl.cdiv(B, MAX_TILE_B)
    if num_tiles % 2:
        num_tiles += 1
    tile_b = _round_up(pl.cdiv(B, num_tiles), 128)
    Bp = num_tiles * tile_b
    zp = jnp.pad(z, ((0, Bp - B), (0, 0))) if Bp != B else z

    # ---- Stage 1: L1 + LeakyReLU + L2 (no bias) + partial BN stats ----------
    h2, psum, psumsq = pl.pallas_call(
        functools.partial(_stage1_kernel, batch=B, tile_b=tile_b,
                          masked=(Bp != B)),
        out_shape=(jax.ShapeDtypeStruct((Bp, HIDDEN), jnp.bfloat16),
                   jax.ShapeDtypeStruct((num_tiles, 1, HIDDEN), jnp.float32),
                   jax.ShapeDtypeStruct((num_tiles, 1, HIDDEN), jnp.float32)),
        grid_spec=pltpu.PrefetchScalarGridSpec(
            num_scalar_prefetch=0,
            grid=(num_tiles,),
            in_specs=[pl.BlockSpec((tile_b, LATENT_DIM), lambda i: (i, 0)),
                      const2(w1), const2(b1), const2(w2)],
            out_specs=(pl.BlockSpec((tile_b, HIDDEN), lambda i: (i, 0)),
                       pl.BlockSpec((1, 1, HIDDEN), lambda i: (i, 0, 0)),
                       pl.BlockSpec((1, 1, HIDDEN), lambda i: (i, 0, 0)))),
        compiler_params=pltpu.CompilerParams(
            dimension_semantics=("parallel",),
            vmem_limit_bytes=VMEM_LIMIT),
    )(zp, w1, b1, w2)

    # ---- Stage 2: in-kernel stats fold + BN affine + LeakyReLU + L3 + Tanh --
    out = pl.pallas_call(
        functools.partial(_stage2_kernel, batch=B),
        out_shape=jax.ShapeDtypeStruct((Bp, OUT_DIM), jnp.float32),
        grid_spec=pltpu.PrefetchScalarGridSpec(
            num_scalar_prefetch=0,
            grid=(num_tiles,),
            in_specs=[pl.BlockSpec((tile_b, HIDDEN), lambda i: (i, 0)),
                      const3(psum), const3(psumsq),
                      const2(gamma), const2(beta),
                      const2(w3), const2(b3)],
            out_specs=pl.BlockSpec((tile_b, OUT_DIM), lambda i: (i, 0))),
        compiler_params=pltpu.CompilerParams(
            dimension_semantics=("parallel",),
            vmem_limit_bytes=VMEM_LIMIT),
    )(h2, psum, psumsq, gamma, beta, w3, b3)

    return out[:B] if Bp != B else out


def init_params(key):
    """Init matching nn.Linear / BatchNorm1d defaults.

    Weights stored (in, out) — transposed vs PyTorch's (out, in) — and cast to
    bf16 (native MXU operand dtype). Biases / BN params stay f32, shape (1, d).
    """
    k1, k2, k3, k4, k5, k6 = jax.random.split(key, 6)

    def linear_init(kw, kb, fan_in, fan_out):
        bound = 1.0 / (fan_in ** 0.5)
        w = jax.random.uniform(kw, (fan_in, fan_out), jnp.float32, -bound, bound)
        b = jax.random.uniform(kb, (1, fan_out), jnp.float32, -bound, bound)
        return w, b

    w1, b1 = linear_init(k1, k2, LATENT_DIM, HIDDEN)
    w2, b2 = linear_init(k3, k4, HIDDEN, HIDDEN)
    w3, b3 = linear_init(k5, k6, HIDDEN, OUT_DIM)
    gamma = jnp.ones((1, HIDDEN), jnp.float32)    # BatchNorm1d default weight
    beta = jnp.zeros((1, HIDDEN), jnp.float32)    # BatchNorm1d default bias
    return (w1.astype(jnp.bfloat16), b1,
            w2.astype(jnp.bfloat16), b2,
            gamma, beta,
            w3.astype(jnp.bfloat16), b3)


def reference_forward(z, params):
    """Pure-JAX (f32) reference, including b2, for the correctness check."""
    w1, b1, w2, b2, gamma, beta, w3, b3 = params
    w1f = w1.astype(jnp.float32)
    w2f = w2.astype(jnp.float32)
    w3f = w3.astype(jnp.float32)
    h1 = z @ w1f + b1
    h1 = jnp.where(h1 >= 0, h1, NEG_SLOPE * h1)
    h2 = h1 @ w2f + b2            # b2 included: cancelled by BN mean subtraction
    mean = jnp.mean(h2, axis=0, keepdims=True)
    var = jnp.mean((h2 - mean) ** 2, axis=0, keepdims=True)
    h2n = (h2 - mean) / jnp.sqrt(var + BN_EPS) * gamma + beta
    h2a = jnp.where(h2n >= 0, h2n, NEG_SLOPE * h2n)
    return jnp.tanh(h2a @ w3f + b3)


if __name__ == "__main__":
    key = jax.random.PRNGKey(0)
    kz, kp = jax.random.split(key)

    B = 2
    z = jax.random.normal(kz, (B, LATENT_DIM), jnp.float32)
    params = init_params(kp)

    fwd = jax.jit(decoder_forward)
    out = jax.block_until_ready(fwd(z, params))

    ref = reference_forward(z, params)
    assert out.shape == (B, OUT_DIM), out.shape
    # bf16 MXU operands -> loosened tolerance vs the f32 reference.
    assert jnp.allclose(out, ref, atol=2e-2, rtol=2e-2), \
        float(jnp.max(jnp.abs(out - ref)))

    print("KERNEL_OK")
</pallas_src>

<mosaic_0001>
module attributes {stable_mosaic.version = 11 : i64} {
  func.func @_fused_kernel(%arg0: i32, %arg1: memref<8x32xf32, #tpu.memory_space<vmem>>, %arg2: memref<32x512xbf16, #tpu.memory_space<vmem>>, %arg3: memref<1x512xf32, #tpu.memory_space<vmem>>, %arg4: memref<512x512xbf16, #tpu.memory_space<vmem>>, %arg5: memref<1x512xf32, #tpu.memory_space<vmem>>, %arg6: memref<1x512xf32, #tpu.memory_space<vmem>>, %arg7: memref<512x256xbf16, #tpu.memory_space<vmem>>, %arg8: memref<1x256xf32, #tpu.memory_space<vmem>>, %arg9: memref<8x256xf32, #tpu.memory_space<vmem>>) attributes {dimension_semantics = [#tpu.dimension_semantics<arbitrary>], iteration_bounds = array<i64: 1>, scalar_prefetch = 0 : i64, scratch_operands = 0 : i64, tpu.core_type = #tpu.core_type<tc>, window_params = [{pipeline_mode = #tpu.pipeline_mode<synchronous>, transform_indices = @transform_0, window_bounds = array<i64: 8, 32>}, {pipeline_mode = #tpu.pipeline_mode<synchronous>, transform_indices = @transform_1, window_bounds = array<i64: 32, 512>}, {pipeline_mode = #tpu.pipeline_mode<synchronous>, transform_indices = @transform_2, window_bounds = array<i64: 1, 512>}, {pipeline_mode = #tpu.pipeline_mode<synchronous>, transform_indices = @transform_3, window_bounds = array<i64: 512, 512>}, {pipeline_mode = #tpu.pipeline_mode<synchronous>, transform_indices = @transform_4, window_bounds = array<i64: 1, 512>}, {pipeline_mode = #tpu.pipeline_mode<synchronous>, transform_indices = @transform_5, window_bounds = array<i64: 1, 512>}, {pipeline_mode = #tpu.pipeline_mode<synchronous>, transform_indices = @transform_6, window_bounds = array<i64: 512, 256>}, {pipeline_mode = #tpu.pipeline_mode<synchronous>, transform_indices = @transform_7, window_bounds = array<i64: 1, 256>}, {pipeline_mode = #tpu.pipeline_mode<synchronous>, transform_indices = @transform_8, window_bounds = array<i64: 8, 256>}]} {
    %c0 = arith.constant 0 : index
    %c0_0 = arith.constant 0 : index
    %0 = vector.load %arg1[%c0, %c0_0] : memref<8x32xf32, #tpu.memory_space<vmem>>, vector<8x32xf32>
    %1 = arith.truncf %0 : vector<8x32xf32> to vector<8x32xbf16>
    %c0_1 = arith.constant 0 : index
    %c0_2 = arith.constant 0 : index
    %2 = vector.load %arg2[%c0_1, %c0_2] : memref<32x512xbf16, #tpu.memory_space<vmem>>, vector<32x512xbf16>
    %cst = arith.constant dense<0.000000e+00> : vector<8x512xf32>
    %3 = tpu.matmul %1, %2, %cst {dimension_numbers = #tpu.dot_dimension_numbers<[1], [0], [0], [1], [0, 0, 1, 1], [], []>} : vector<8x32xbf16>, vector<32x512xbf16>, vector<8x512xf32> -> vector<8x512xf32>
    %c0_3 = arith.constant 0 : index
    %c0_4 = arith.constant 0 : index
    %4 = vector.load %arg3[%c0_3, %c0_4] : memref<1x512xf32, #tpu.memory_space<vmem>>, vector<1x512xf32>
    %5 = vector.broadcast %4 : vector<1x512xf32> to vector<8x512xf32>
    %6 = arith.addf %3, %5 : vector<8x512xf32>
    %cst_5 = arith.constant 2.000000e-01 : f32
    %7 = vector.broadcast %cst_5 : f32 to vector<8x512xf32>
    %8 = arith.mulf %7, %6 : vector<8x512xf32>
    %9 = arith.maximumf %6, %8 : vector<8x512xf32>
    %10 = arith.truncf %9 : vector<8x512xf32> to vector<8x512xbf16>
    %c0_6 = arith.constant 0 : index
    %c0_7 = arith.constant 0 : index
    %11 = vector.load %arg4[%c0_6, %c0_7] : memref<512x512xbf16, #tpu.memory_space<vmem>>, vector<512x512xbf16>
    %cst_8 = arith.constant dense<0.000000e+00> : vector<8x512xf32>
    %12 = tpu.matmul %10, %11, %cst_8 {dimension_numbers = #tpu.dot_dimension_numbers<[1], [0], [0], [1], [0, 0, 1, 1], [], []>} : vector<8x512xbf16>, vector<512x512xbf16>, vector<8x512xf32> -> vector<8x512xf32>
    %13 = tpu.iota {dimensions = array<i32: 0>} : vector<8x512xi32>
    %c2_i32 = arith.constant 2 : i32
    %14 = vector.broadcast %c2_i32 : i32 to vector<8x512xi32>
    %15 = arith.cmpi slt, %13, %14 : vector<8x512xi32>
    %cst_9 = arith.constant 0.000000e+00 : f32
    %16 = vector.broadcast %cst_9 : f32 to vector<8x512xf32>
    %17 = arith.select %15, %12, %16 : vector<8x512xi1>, vector<8x512xf32>
    %cst_10 = arith.constant dense<0.000000e+00> : vector<512xf32>
    %18 = vector.multi_reduction <add>, %17, %cst_10 [0] : vector<8x512xf32> to vector<512xf32>
    %19 = vector.shape_cast %18 : vector<512xf32> to vector<1x512xf32>
    %cst_11 = arith.constant 5.000000e-01 : f32
    %20 = vector.broadcast %cst_11 : f32 to vector<1x512xf32>
    %21 = arith.mulf %19, %20 : vector<1x512xf32>
    %22 = vector.broadcast %21 : vector<1x512xf32> to vector<8x512xf32>
    %23 = arith.subf %12, %22 : vector<8x512xf32>
    %cst_12 = arith.constant 0.000000e+00 : f32
    %24 = vector.broadcast %cst_12 : f32 to vector<8x512xf32>
    %25 = arith.select %15, %23, %24 : vector<8x512xi1>, vector<8x512xf32>
    %26 = arith.mulf %25, %25 : vector<8x512xf32>
    %cst_13 = arith.constant dense<0.000000e+00> : vector<512xf32>
    %27 = vector.multi_reduction <add>, %26, %cst_13 [0] : vector<8x512xf32> to vector<512xf32>
    %28 = vector.shape_cast %27 : vector<512xf32> to vector<1x512xf32>
    %cst_14 = arith.constant 5.000000e-01 : f32
    %29 = vector.broadcast %cst_14 : f32 to vector<1x512xf32>
    %30 = arith.mulf %28, %29 : vector<1x512xf32>
    %cst_15 = arith.constant 9.99999974E-6 : f32
    %31 = vector.broadcast %cst_15 : f32 to vector<1x512xf32>
    %32 = arith.addf %30, %31 : vector<1x512xf32>
    %33 = math.rsqrt %32 : vector<1x512xf32>
    %c0_16 = arith.constant 0 : index
    %c0_17 = arith.constant 0 : index
    %34 = vector.load %arg5[%c0_16, %c0_17] : memref<1x512xf32, #tpu.memory_space<vmem>>, vector<1x512xf32>
    %35 = arith.mulf %34, %33 : vector<1x512xf32>
    %36 = vector.broadcast %35 : vector<1x512xf32> to vector<8x512xf32>
    %37 = arith.mulf %23, %36 : vector<8x512xf32>
    %c0_18 = arith.constant 0 : index
    %c0_19 = arith.constant 0 : index
    %38 = vector.load %arg6[%c0_18, %c0_19] : memref<1x512xf32, #tpu.memory_space<vmem>>, vector<1x512xf32>
    %39 = vector.broadcast %38 : vector<1x512xf32> to vector<8x512xf32>
    %40 = arith.addf %37, %39 : vector<8x512xf32>
    %cst_20 = arith.constant 2.000000e-01 : f32
    %41 = vector.broadcast %cst_20 : f32 to vector<8x512xf32>
    %42 = arith.mulf %41, %40 : vector<8x512xf32>
    %43 = arith.maximumf %40, %42 : vector<8x512xf32>
    %44 = arith.truncf %43 : vector<8x512xf32> to vector<8x512xbf16>
    %c0_21 = arith.constant 0 : index
    %c0_22 = arith.constant 0 : index
    %45 = vector.load %arg7[%c0_21, %c0_22] : memref<512x256xbf16, #tpu.memory_space<vmem>>, vector<512x256xbf16>
    %cst_23 = arith.constant dense<0.000000e+00> : vector<8x256xf32>
    %46 = tpu.matmul %44, %45, %cst_23 {dimension_numbers = #tpu.dot_dimension_numbers<[1], [0], [0], [1], [0, 0, 1, 1], [], []>} : vector<8x512xbf16>, vector<512x256xbf16>, vector<8x256xf32> -> vector<8x256xf32>
    %c0_24 = arith.constant 0 : index
    %c0_25 = arith.constant 0 : index
    %47 = vector.load %arg8[%c0_24, %c0_25] : memref<1x256xf32, #tpu.memory_space<vmem>>, vector<1x256xf32>
    %48 = vector.broadcast %47 : vector<1x256xf32> to vector<8x256xf32>
    %49 = arith.addf %46, %48 : vector<8x256xf32>
    %50 = math.tanh %49 : vector<8x256xf32>
    %c0_26 = arith.constant 0 : index
    %c0_27 = arith.constant 0 : index
    %51 = vector.load %arg9[%c0_26, %c0_27] : memref<8x256xf32, #tpu.memory_space<vmem>>, vector<8x256xf32>
    tpu.vector_store %arg9[%c0_26, %c0_27], %50 {strides = array<i32>} : memref<8x256xf32, #tpu.memory_space<vmem>>, vector<8x256xf32>,
    return
  }
  func.func @transform_0(%arg0: i32) -> (i32, i32) {
    %c0_i32 = arith.constant 0 : i32
    %c0_i32_0 = arith.constant 0 : i32
    %c0_i32_1 = arith.constant 0 : i32
    return %c0_i32, %c0_i32_0 : i32, i32
  }
  func.func @transform_1(%arg0: i32) -> (i32, i32) {
    %c0_i32 = arith.constant 0 : i32
    %c0_i32_0 = arith.constant 0 : i32
    %c0_i32_1 = arith.constant 0 : i32
    return %c0_i32, %c0_i32_0 : i32, i32
  }
  func.func @transform_2(%arg0: i32) -> (i32, i32) {
    %c0_i32 = arith.constant 0 : i32
    %c0_i32_0 = arith.constant 0 : i32
    %c0_i32_1 = arith.constant 0 : i32
    return %c0_i32, %c0_i32_0 : i32, i32
  }
  func.func @transform_3(%arg0: i32) -> (i32, i32) {
    %c0_i32 = arith.constant 0 : i32
    %c0_i32_0 = arith.constant 0 : i32
    %c0_i32_1 = arith.constant 0 : i32
    return %c0_i32, %c0_i32_0 : i32, i32
  }
  func.func @transform_4(%arg0: i32) -> (i32, i32) {
    %c0_i32 = arith.constant 0 : i32
    %c0_i32_0 = arith.constant 0 : i32
    %c0_i32_1 = arith.constant 0 : i32
    return %c0_i32, %c0_i32_0 : i32, i32
  }
  func.func @transform_5(%arg0: i32) -> (i32, i32) {
    %c0_i32 = arith.constant 0 : i32
    %c0_i32_0 = arith.constant 0 : i32
    %c0_i32_1 = arith.constant 0 : i32
    return %c0_i32, %c0_i32_0 : i32, i32
  }
  func.func @transform_6(%arg0: i32) -> (i32, i32) {
    %c0_i32 = arith.constant 0 : i32
    %c0_i32_0 = arith.constant 0 : i32
    %c0_i32_1 = arith.constant 0 : i32
    return %c0_i32, %c0_i32_0 : i32, i32
  }
  func.func @transform_7(%arg0: i32) -> (i32, i32) {
    %c0_i32 = arith.constant 0 : i32
    %c0_i32_0 = arith.constant 0 : i32
    %c0_i32_1 = arith.constant 0 : i32
    return %c0_i32, %c0_i32_0 : i32, i32
  }
  func.func @transform_8(%arg0: i32) -> (i32, i32) {
    %c0_i32 = arith.constant 0 : i32
    %c0_i32_0 = arith.constant 0 : i32
    %c0_i32_1 = arith.constant 0 : i32
    return %c0_i32, %c0_i32_0 : i32, i32
  }
}

</mosaic_0001>

<bundles_post_ra>
// kernel: decoder_forward.1
= control target key start
LH: loop header
LB: loop body
LE: loop exit
PB: predicated region body
PF: predicated region fallthrough
CT: control target
= control target key end

     0   :  { %13 = vsyncpa [#allocation3], 0  ;;  %s2645_s0 = inlined_call_operand.vmem [shape: f32[8,32], index: 0, kind: input, shape index: {}]   ;;  %s2646_s1 = inlined_call_operand.hbm [shape: bf16[32,512], index: 1, kind: input, shape index: {}]   ;;  %s2647_s2 = inlined_call_operand.vmem [shape: f32[1,512], index: 2, kind: input, shape index: {}]   ;;  %s2648_s3 = inlined_call_operand.hbm [shape: bf16[512,512], index: 3, kind: input, shape index: {}]   ;;  %s2649_s4 = inlined_call_operand.vmem [shape: f32[1,512], index: 4, kind: input, shape index: {}]   ;;  %s2650_s5 = inlined_call_operand.vmem [shape: f32[1,512], index: 5, kind: input, shape index: {}]   ;;  %s2651_s6 = inlined_call_operand.hbm [shape: bf16[512,256], index: 6, kind: input, shape index: {}]   ;;  %s2652_s7 = inlined_call_operand.vmem [shape: f32[1,256], index: 7, kind: input, shape index: {}]   ;;  %s2653_s8 = inlined_call_operand.vmem [shape: f32[8,256], index: 8, kind: output, shape index: {}]  }
   0x1   :  { %14 = vsyncpa [#allocation5], 0  ;;  %s2443_s27 = smov [#allocation4]   ;;  %s2444_s29 = smov [#allocation2]  }
   0x2   :  { %s36_s28 = sshll.u32 %s2443_s27, 4  ;;  %s22_s30 = sshll.u32 %s2444_s29, 4  ;;  %s37_s28 = int_to_ptr.vmem [resolvable:$true] %s36_s28  ;;  %s2497_s30 = int_to_ptr.vmem [resolvable:$true] %s22_s30 }
   0x3   :  { %s2373_s11 = scalar_lea.hbm %s2648_s3, 16384 }
   0x4   :  { %p2374_p0 = scmp.ne.s32.totalorder %s2648_s3, %s2373_s11  ;;  %p2377_p1 = scmp.lt.u32.totalorder %s2373_s11, %s2648_s3 }
   0x6   :  { %p2379_p2 = pnand %p2377_p1, %p2374_p0 }
   0x8   :  { %2382 = shalt.err (!%p2379_p2)
}
   0x9   :  { %s2383_s16 = scalar_lea.vmem %s37_s28, 16384  ;;  %p2388_p4 = scmp.lt.s32.totalorder %s37_s28, %s37_s28 }
   0xa   :  { %p2384_p3 = scmp.ne.s32.totalorder %s37_s28, %s2383_s16  ;;  %p2389_p5 = scmp.lt.s32.totalorder %s2383_s16, %s2383_s16 }
   0xc   :  { %p2390_p6 = por %p2389_p5, %p2388_p4 }
   0xe   :  { %p2391_p7 = pnand %p2390_p6, %p2384_p3 }
  0x10   :  { %2394 = shalt.err (!%p2391_p7)
}
  0x11   :  { %s2445_s17 = smov 256   ;;  %s2446_s18 = smov 16  }
  0x12   :  { %42 = dma.hbm_to_vmem [thread:$0]  %s2648_s3, 16384, %s37_s28, [#allocation5], %s2445_s17, %s2445_s17, %s2446_s18  }
  0x13   :  { %s2395_s23 = scalar_lea.hbm %s2646_s1, 1024 }
  0x14   :  { %p2396_p8 = scmp.ne.s32.totalorder %s2646_s1, %s2395_s23  ;;  %p2399_p9 = scmp.lt.u32.totalorder %s2395_s23, %s2646_s1 }
  0x16   :  { %p2401_p10 = pnand %p2399_p9, %p2396_p8 }
  0x18   :  { %2404 = shalt.err (!%p2401_p10)
}
  0x19   :  { %s2405_s29 = scalar_lea.vmem %s2497_s30, 1024  ;;  %p2410_p12 = scmp.lt.s32.totalorder %s2497_s30, %s2497_s30 }
  0x1a   :  { %p2406_p11 = scmp.ne.s32.totalorder %s2497_s30, %s2405_s29  ;;  %p2411_p13 = scmp.lt.s32.totalorder %s2405_s29, %s2405_s29 }
  0x1c   :  { %p2412_p0 = por %p2411_p13, %p2410_p12 }
  0x1e   :  { %p2413_p1 = pnand %p2412_p0, %p2406_p11 }
  0x20   :  { %2416 = shalt.err (!%p2413_p1)
}
  0x21   :  { %28 = dma.hbm_to_vmem [thread:$0]  %s2646_s1, 1024, %s2497_s30, [#allocation3], %s2445_s17, %s2445_s17, %s2446_s18  }
  0x22   :  { %s2447_s9 = smov [#allocation6]   ;;  %s2417_s13 = scalar_lea.hbm %s2651_s6, 8192 }
  0x23   :  { %s52_s10 = sshll.u32 %s2447_s9, 4  ;;  %p2418_p2 = scmp.ne.s32.totalorder %s2651_s6, %s2417_s13  ;;  %s53_s10 = int_to_ptr.vmem [resolvable:$true] %s52_s10 }
  0x24   :  { %p2421_p3 = scmp.lt.u32.totalorder %s2417_s13, %s2651_s6 }
  0x26   :  { %p2423_p4 = pnand %p2421_p3, %p2418_p2 }
  0x28   :  { %2426 = shalt.err (!%p2423_p4)
}
  0x29   :  { %s2427_s20 = scalar_lea.vmem %s53_s10, 8192  ;;  %p2432_p6 = scmp.lt.s32.totalorder %s53_s10, %s53_s10 }
  0x2a   :  { %p2428_p5 = scmp.ne.s32.totalorder %s53_s10, %s2427_s20  ;;  %p2433_p7 = scmp.lt.s32.totalorder %s2427_s20, %s2427_s20 }
  0x2c   :  { %p2434_p8 = por %p2433_p7, %p2432_p6 }
  0x2e   :  { %p2435_p9 = pnand %p2434_p8, %p2428_p5 }
  0x30   :  { %2438 = shalt.err (!%p2435_p9)
}
  0x31   :  { %s2448_s1 = smov 128   ;;  %s2449_s30 = smov 8  }
  0x32   :  { %58 = dma.hbm_to_vmem [thread:$0]  %s2651_s6, 8192, %s53_s10, [#allocation5], %s2448_s1, %s2448_s1, %s2449_s30  }
  0x33   :  { %2439 = dma.done.wait [#allocation3], 1024  }
  0x34   :  { %2440 = vsyncadd [#allocation3], 4294966272 }
  0x35   :  { %2441 = dma.done.wait [#allocation5], 24576  }
  0x36   :  { %2442 = vsyncadd [#allocation5], 4294942720  ;;  %v2450_v0 = vmov 0   ;;  %v2061_v1 = vld [vmem:[#allocation2 + $0x4] ss:$16 sps:$4 sm:$0xff]   ;;  %vm143_vm0 = vcmask 261120  }
  0x37   :  { %179 = vmatprep.mubr.bf16.mxu0 %v2450_v0  ;;  %220 = vmatprep.mubr.bf16.mxu1 %v2450_v0  ;;  %v2063_v2 = vld [vmem:[#allocation2 + $0xc] ss:$16 sps:$4 sm:$0xff]   ;;  %v2065_v3 = vld [vmem:[#allocation2] ss:$16 sps:$4 sm:$0xff]   ;;  %v2066_v4 = vld [vmem:[#allocation2 + $0x8] ss:$16 sps:$4 sm:$0xff]  }
  0x38   :  { %147 = vmatprep.subr.bf16.mxu0 %v2061_v1  ;;  %188 = vmatprep.subr.bf16.mxu1 %v2063_v2  ;;  %v2067_v5 = vld [vmem:[#allocation2 + $0x24] ss:$16 sps:$4 sm:$0xff]   ;;  %v2069_v6 = vld [vmem:[#allocation2 + $0x2c] ss:$16 sps:$4 sm:$0xff]   ;;  %v2071_v7 = vld [vmem:[#allocation2 + $0x20] ss:$16 sps:$4 sm:$0xff]  }
  0x39   :  { %148 = vmatpush1.bf16.msra.mxu0 %v2065_v3  ;;  %189 = vmatpush1.bf16.msra.mxu1 %v2066_v4  ;;  %v2072_v8 = vld [vmem:[#allocation2 + $0x28] ss:$16 sps:$4 sm:$0xff]   ;;  %v71_v9 = vld [vmem:[%s2645_s0] sm:$0xff] }
  0x3a   :  { %149 = vmatprep.subr.bf16.mxu0 %v2067_v5  ;;  %190 = vmatprep.subr.bf16.mxu1 %v2069_v6  ;;  %v2073_v10 = vld [vmem:[#allocation4] ss:$16 sps:$4 sm:$0xff]   ;;  %v2075_v11 = vld [vmem:[#allocation4 + $0x4] ss:$16 sps:$4 sm:$0xff]   ;;  %v72_v12 = vpack.c.bf16 %v71_v9, %v71_v9 }
  0x3b   :  { %v2076_v13 = vld [vmem:[#allocation4 + $0x200] ss:$16 sps:$4 sm:$0xff]   ;;  %v2078_v14 = vld [vmem:[#allocation4 + $0x204] ss:$16 sps:$4 sm:$0xff]  }
  0x3c   :  { %v2081_v15 = vld [vmem:[#allocation4 + $0x24] ss:$16 sps:$4 sm:$0xff]   ;;  %v2079_v17 = vld [vmem:[#allocation4 + $0x20] ss:$16 sps:$4 sm:$0xff]  }
  0x3d   :  { %150 = vmatpush1.bf16.msra.mxu0 %v2071_v7  ;;  %191 = vmatpush1.bf16.msra.mxu1 %v2072_v8  ;;  %v2084_v16 = vld [vmem:[#allocation4 + $0x224] ss:$16 sps:$4 sm:$0xff]   ;;  %v2082_v18 = vld [vmem:[#allocation4 + $0x220] ss:$16 sps:$4 sm:$0xff]  }
  0x3e   :  { %1009 = vmatprep.subr.bf16.mxu1 %v2075_v11  ;;  %1050 = vmatprep.subr.bf16.mxu0 %v2078_v14  ;;  %v2087_v19 = vld [vmem:[#allocation4 + $0x44] ss:$16 sps:$4 sm:$0xff]   ;;  %v2085_v21 = vld [vmem:[#allocation4 + $0x40] ss:$16 sps:$4 sm:$0xff]   ;;  %v2171_v11 = vld [vmem:[#allocation4 + $0xc] ss:$16 sps:$4 sm:$0xff]  }
  0x3f   :  { %v2090_v20 = vld [vmem:[#allocation4 + $0x244] ss:$16 sps:$4 sm:$0xff]   ;;  %v2088_v22 = vld [vmem:[#allocation4 + $0x240] ss:$16 sps:$4 sm:$0xff]  }
  0x40   :  { %1846 = vmatmul.mubr.msk.bf16.vlgmr.msra.gmra.mrb[0].mxu0 %vm143_vm0, %v72_v12  ;;  %1847 = vmatmul.mubr.msk.bf16.vlgmr.msra.gmra.mrb[0].mxu1 %vm143_vm0, %v72_v12  ;;  %v2093_v23 = vld [vmem:[#allocation4 + $0x64] ss:$16 sps:$4 sm:$0xff]   ;;  %v2091_v25 = vld [vmem:[#allocation4 + $0x60] ss:$16 sps:$4 sm:$0xff]   ;;  %v83_v12 = vlaneseq }
  0x41   :  { %1010 = vmatpush1.bf16.msra.mxu1 %v2073_v10  ;;  %1051 = vmatpush1.bf16.msra.mxu0 %v2076_v13  ;;  %v2096_v24 = vld [vmem:[#allocation4 + $0x264] ss:$16 sps:$4 sm:$0xff]   ;;  %v2094_v26 = vld [vmem:[#allocation4 + $0x260] ss:$16 sps:$4 sm:$0xff]  }
  0x42   :  { %1011 = vmatprep.subr.bf16.mxu1 %v2081_v15  ;;  %1052 = vmatprep.subr.bf16.mxu0 %v2084_v16  ;;  %v2099_v27 = vld [vmem:[#allocation4 + $0x84] ss:$16 sps:$4 sm:$0xff]   ;;  %v2097_v29 = vld [vmem:[#allocation4 + $0x80] ss:$16 sps:$4 sm:$0xff]   ;;  %v2543_v13 = vshrl.u32 %v83_v12, 7 }
  0x43   :  { %v2102_v28 = vld [vmem:[#allocation4 + $0x284] ss:$16 sps:$4 sm:$0xff]   ;;  %v2100_v30 = vld [vmem:[#allocation4 + $0x280] ss:$16 sps:$4 sm:$0xff]   ;;  %v2216_v12 = vld [vmem:[#allocation4 + $0x1ec] ss:$16 sps:$4 sm:$0xff]  }
  0x44   :  { %v2105_v31 = vld [vmem:[#allocation4 + $0xa4] ss:$16 sps:$4 sm:$0xff]   ;;  %v2103_v33 = vld [vmem:[#allocation4 + $0xa0] ss:$16 sps:$4 sm:$0xff]   ;;  %v2546_v14 = vsub.s32 0, %v2543_v13  ;;  %v2549_v15 = vsub.s32 2, %v2543_v13 }
  0x45   :  { %1012 = vmatpush1.bf16.msra.mxu1 %v2079_v17  ;;  %1053 = vmatpush1.bf16.msra.mxu0 %v2082_v18  ;;  %v2108_v32 = vld [vmem:[#allocation4 + $0x2a4] ss:$16 sps:$4 sm:$0xff]   ;;  %v2106_v34 = vld [vmem:[#allocation4 + $0x2a0] ss:$16 sps:$4 sm:$0xff]   ;;  %v2555_v17 = vsub.s32 1, %v2543_v13  ;;  %v2558_v18 = vsub.s32 3, %v2543_v13 }
  0x46   :  { %1013 = vmatprep.subr.bf16.mxu1 %v2087_v19  ;;  %1054 = vmatprep.subr.bf16.mxu0 %v2090_v20  ;;  %v2111_v35 = vld [vmem:[#allocation4 + $0xc4] ss:$16 sps:$4 sm:$0xff]   ;;  %v2109_v37 = vld [vmem:[#allocation4 + $0xc0] ss:$16 sps:$4 sm:$0xff]   ;;  %vm1175_vm1 = vcmp.lt.s32.totalorder %v2543_v13, 2 }
  0x47   :  { %v2114_v36 = vld [vmem:[#allocation4 + $0x2c4] ss:$16 sps:$4 sm:$0xff]   ;;  %v2112_v38 = vld [vmem:[#allocation4 + $0x2c0] ss:$16 sps:$4 sm:$0xff]  }
  0x48   :  { %v2117_v39 = vld [vmem:[#allocation4 + $0xe4] ss:$16 sps:$4 sm:$0xff]   ;;  %v2115_v41 = vld [vmem:[#allocation4 + $0xe0] ss:$16 sps:$4 sm:$0xff]  }
  0x49   :  { %1014 = vmatpush1.bf16.msra.mxu1 %v2085_v21  ;;  %1055 = vmatpush1.bf16.msra.mxu0 %v2088_v22  ;;  %v2120_v40 = vld [vmem:[#allocation4 + $0x2e4] ss:$16 sps:$4 sm:$0xff]   ;;  %v2118_v42 = vld [vmem:[#allocation4 + $0x2e0] ss:$16 sps:$4 sm:$0xff]  }
  0x4a   :  { %1015 = vmatprep.subr.bf16.mxu1 %v2093_v23  ;;  %1056 = vmatprep.subr.bf16.mxu0 %v2096_v24  ;;  %v2123_v43 = vld [vmem:[#allocation4 + $0x104] ss:$16 sps:$4 sm:$0xff]   ;;  %v2121_v45 = vld [vmem:[#allocation4 + $0x100] ss:$16 sps:$4 sm:$0xff]  }
  0x4b   :  { %v2126_v44 = vld [vmem:[#allocation4 + $0x304] ss:$16 sps:$4 sm:$0xff]   ;;  %v2124_v46 = vld [vmem:[#allocation4 + $0x300] ss:$16 sps:$4 sm:$0xff]  }
  0x4c   :  { %v2129_v47 = vld [vmem:[#allocation4 + $0x124] ss:$16 sps:$4 sm:$0xff]   ;;  %v2127_v49 = vld [vmem:[#allocation4 + $0x120] ss:$16 sps:$4 sm:$0xff]  }
  0x4d   :  { %1016 = vmatpush1.bf16.msra.mxu1 %v2091_v25  ;;  %1057 = vmatpush1.bf16.msra.mxu0 %v2094_v26  ;;  %v2132_v48 = vld [vmem:[#allocation4 + $0x324] ss:$16 sps:$4 sm:$0xff]   ;;  %v2130_v50 = vld [vmem:[#allocation4 + $0x320] ss:$16 sps:$4 sm:$0xff]  }
  0x4e   :  { %1017 = vmatprep.subr.bf16.mxu1 %v2099_v27  ;;  %1058 = vmatprep.subr.bf16.mxu0 %v2102_v28  ;;  %v2135_v51 = vld [vmem:[#allocation4 + $0x144] ss:$16 sps:$4 sm:$0xff]   ;;  %v2133_v53 = vld [vmem:[#allocation4 + $0x140] ss:$16 sps:$4 sm:$0xff]  }
  0x4f   :  { %v2138_v52 = vld [vmem:[#allocation4 + $0x344] ss:$16 sps:$4 sm:$0xff]   ;;  %v2136_v54 = vld [vmem:[#allocation4 + $0x340] ss:$16 sps:$4 sm:$0xff]  }
  0x50   :  { %v2141_v55 = vld [vmem:[#allocation4 + $0x164] ss:$16 sps:$4 sm:$0xff]   ;;  %v2139_v57 = vld [vmem:[#allocation4 + $0x160] ss:$16 sps:$4 sm:$0xff]  }
  0x51   :  { %1018 = vmatpush1.bf16.msra.mxu1 %v2097_v29  ;;  %1059 = vmatpush1.bf16.msra.mxu0 %v2100_v30  ;;  %v2144_v56 = vld [vmem:[#allocation4 + $0x364] ss:$16 sps:$4 sm:$0xff]   ;;  %v2142_v58 = vld [vmem:[#allocation4 + $0x360] ss:$16 sps:$4 sm:$0xff]  }
  0x52   :  { %1019 = vmatprep.subr.bf16.mxu1 %v2105_v31  ;;  %1060 = vmatprep.subr.bf16.mxu0 %v2108_v32  ;;  %v2147_v59 = vld [vmem:[#allocation4 + $0x184] ss:$16 sps:$4 sm:$0xff]   ;;  %v2145_v61 = vld [vmem:[#allocation4 + $0x180] ss:$16 sps:$4 sm:$0xff]  }
  0x53   :  { %v2150_v60 = vld [vmem:[#allocation4 + $0x384] ss:$16 sps:$4 sm:$0xff]   ;;  %v2148_v62 = vld [vmem:[#allocation4 + $0x380] ss:$16 sps:$4 sm:$0xff]  }
  0x54   :  { %v2153_v63 = vld [vmem:[#allocation4 + $0x1a4] ss:$16 sps:$4 sm:$0xff]   ;;  %v2151_v1 = vld [vmem:[#allocation4 + $0x1a0] ss:$16 sps:$4 sm:$0xff]  }
  0x55   :  { %1020 = vmatpush1.bf16.msra.mxu1 %v2103_v33  ;;  %1061 = vmatpush1.bf16.msra.mxu0 %v2106_v34  ;;  %v2156_v0 = vld [vmem:[#allocation4 + $0x3a4] ss:$16 sps:$4 sm:$0xff]   ;;  %v2154_v2 = vld [vmem:[#allocation4 + $0x3a0] ss:$16 sps:$4 sm:$0xff]  }
  0x56   :  { %1021 = vmatprep.subr.bf16.mxu1 %v2111_v35  ;;  %1062 = vmatprep.subr.bf16.mxu0 %v2114_v36  ;;  %v2159_v3 = vld [vmem:[#allocation4 + $0x1c4] ss:$16 sps:$4 sm:$0xff]   ;;  %v2157_v4 = vld [vmem:[#allocation4 + $0x1c0] ss:$16 sps:$4 sm:$0xff]  }
  0x57   :  { %v2162_v5 = vld [vmem:[#allocation4 + $0x3c4] ss:$16 sps:$4 sm:$0xff]   ;;  %v2160_v6 = vld [vmem:[#allocation4 + $0x3c0] ss:$16 sps:$4 sm:$0xff]  }
  0x58   :  { %v2165_v7 = vld [vmem:[#allocation4 + $0x1e4] ss:$16 sps:$4 sm:$0xff]   ;;  %v2163_v8 = vld [vmem:[#allocation4 + $0x1e0] ss:$16 sps:$4 sm:$0xff]  }
  0x59   :  { %1022 = vmatpush1.bf16.msra.mxu1 %v2109_v37  ;;  %1063 = vmatpush1.bf16.msra.mxu0 %v2112_v38  ;;  %v2168_v9 = vld [vmem:[#allocation4 + $0x3e4] ss:$16 sps:$4 sm:$0xff]   ;;  %v2166_v10 = vld [vmem:[#allocation4 + $0x3e0] ss:$16 sps:$4 sm:$0xff]  }
  0x5a   :  { %1023 = vmatprep.subr.bf16.mxu1 %v2117_v39  ;;  %1064 = vmatprep.subr.bf16.mxu0 %v2120_v40  ;;  %v81_v16 = vld [vmem:[%s2647_s2] sm:$0xf] }
  0x5b   :  { %v86_v19 = vrot.slane %v81_v16, %v2546_v14  ;;  %v94_v20 = vrot.slane %v81_v16, %v2549_v15  ;;  %v90_v21 = vrot.slane %v81_v16, %v2555_v17  ;;  %v98_v22 = vrot.slane %v81_v16, %v2558_v18  ;;  %v2214_v16 = vld [vmem:[#allocation4 + $0x1e8] ss:$16 sps:$4 sm:$0xff]  }
  0x5d   :  { %1024 = vmatpush1.bf16.msra.mxu1 %v2115_v41  ;;  %1065 = vmatpush1.bf16.msra.mxu0 %v2118_v42 }
  0x5e   :  { %1025 = vmatprep.subr.bf16.mxu1 %v2123_v43  ;;  %1066 = vmatprep.subr.bf16.mxu0 %v2126_v44 }
  0x61   :  { %1026 = vmatpush1.bf16.msra.mxu1 %v2121_v45  ;;  %1067 = vmatpush1.bf16.msra.mxu0 %v2124_v46  ;;  %v2169_v46 = vld [vmem:[#allocation4 + $0x8] ss:$16 sps:$4 sm:$0xff]  }
  0x62   :  { %1027 = vmatprep.subr.bf16.mxu1 %v2129_v47  ;;  %1068 = vmatprep.subr.bf16.mxu0 %v2132_v48  ;;  %v2174_v48 = vld [vmem:[#allocation4 + $0x2c] ss:$16 sps:$4 sm:$0xff]  }
  0x65   :  { %1028 = vmatpush1.bf16.msra.mxu1 %v2127_v49  ;;  %1069 = vmatpush1.bf16.msra.mxu0 %v2130_v50  ;;  %v2172_v49 = vld [vmem:[#allocation4 + $0x28] ss:$16 sps:$4 sm:$0xff]   ;;  %v2177_v50 = vld [vmem:[#allocation4 + $0x4c] ss:$16 sps:$4 sm:$0xff]  }
  0x66   :  { %1029 = vmatprep.subr.bf16.mxu1 %v2135_v51  ;;  %1070 = vmatprep.subr.bf16.mxu0 %v2138_v52  ;;  %v2175_v51 = vld [vmem:[#allocation4 + $0x48] ss:$16 sps:$4 sm:$0xff]   ;;  %v2180_v52 = vld [vmem:[#allocation4 + $0x6c] ss:$16 sps:$4 sm:$0xff]  }
  0x69   :  { %1030 = vmatpush1.bf16.msra.mxu1 %v2133_v53  ;;  %1071 = vmatpush1.bf16.msra.mxu0 %v2136_v54  ;;  %v2178_v53 = vld [vmem:[#allocation4 + $0x68] ss:$16 sps:$4 sm:$0xff]   ;;  %v2183_v54 = vld [vmem:[#allocation4 + $0x8c] ss:$16 sps:$4 sm:$0xff]  }
  0x6a   :  { %1031 = vmatprep.subr.bf16.mxu1 %v2141_v55  ;;  %1072 = vmatprep.subr.bf16.mxu0 %v2144_v56  ;;  %v2181_v55 = vld [vmem:[#allocation4 + $0x88] ss:$16 sps:$4 sm:$0xff]   ;;  %v2186_v56 = vld [vmem:[#allocation4 + $0xac] ss:$16 sps:$4 sm:$0xff]  }
  0x6d   :  { %1032 = vmatpush1.bf16.msra.mxu1 %v2139_v57  ;;  %1073 = vmatpush1.bf16.msra.mxu0 %v2142_v58  ;;  %v2184_v57 = vld [vmem:[#allocation4 + $0xa8] ss:$16 sps:$4 sm:$0xff]   ;;  %v2189_v58 = vld [vmem:[#allocation4 + $0xcc] ss:$16 sps:$4 sm:$0xff]  }
  0x6e   :  { %1033 = vmatprep.subr.bf16.mxu1 %v2147_v59  ;;  %1074 = vmatprep.subr.bf16.mxu0 %v2150_v60  ;;  %v2187_v59 = vld [vmem:[#allocation4 + $0xc8] ss:$16 sps:$4 sm:$0xff]   ;;  %v2192_v60 = vld [vmem:[#allocation4 + $0xec] ss:$16 sps:$4 sm:$0xff]  }
  0x71   :  { %1034 = vmatpush1.bf16.msra.mxu1 %v2145_v61  ;;  %1075 = vmatpush1.bf16.msra.mxu0 %v2148_v62  ;;  %v2190_v61 = vld [vmem:[#allocation4 + $0xe8] ss:$16 sps:$4 sm:$0xff]   ;;  %v2195_v62 = vld [vmem:[#allocation4 + $0x10c] ss:$16 sps:$4 sm:$0xff]  }
  0x72   :  { %1035 = vmatprep.subr.bf16.mxu1 %v2153_v63  ;;  %1076 = vmatprep.subr.bf16.mxu0 %v2156_v0  ;;  %v2193_v63 = vld [vmem:[#allocation4 + $0x108] ss:$16 sps:$4 sm:$0xff]   ;;  %v2198_v0 = vld [vmem:[#allocation4 + $0x12c] ss:$16 sps:$4 sm:$0xff]  }
  0x75   :  { %1036 = vmatpush1.bf16.msra.mxu1 %v2151_v1  ;;  %1077 = vmatpush1.bf16.msra.mxu0 %v2154_v2  ;;  %v2196_v1 = vld [vmem:[#allocation4 + $0x128] ss:$16 sps:$4 sm:$0xff]   ;;  %v2201_v2 = vld [vmem:[#allocation4 + $0x14c] ss:$16 sps:$4 sm:$0xff]  }
  0x76   :  { %1037 = vmatprep.subr.bf16.mxu1 %v2159_v3  ;;  %1078 = vmatprep.subr.bf16.mxu0 %v2162_v5  ;;  %v2199_v3 = vld [vmem:[#allocation4 + $0x148] ss:$16 sps:$4 sm:$0xff]  }
  0x77   :  { %v2202_v5 = vld [vmem:[#allocation4 + $0x168] ss:$16 sps:$4 sm:$0xff]  }
  0x79   :  { %1038 = vmatpush1.bf16.msra.mxu1 %v2157_v4  ;;  %1079 = vmatpush1.bf16.msra.mxu0 %v2160_v6  ;;  %v2204_v4 = vld [vmem:[#allocation4 + $0x16c] ss:$16 sps:$4 sm:$0xff]  }
  0x7a   :  { %1039 = vmatprep.subr.bf16.mxu1 %v2165_v7  ;;  %1080 = vmatprep.subr.bf16.mxu0 %v2168_v9  ;;  %v2207_v6 = vld [vmem:[#allocation4 + $0x18c] ss:$16 sps:$4 sm:$0xff]   ;;  %v2205_v7 = vld [vmem:[#allocation4 + $0x188] ss:$16 sps:$4 sm:$0xff]  }
  0x7b   :  { %v2208_v9 = vld [vmem:[#allocation4 + $0x1a8] ss:$16 sps:$4 sm:$0xff]  }
  0x7d   :  { %1040 = vmatpush1.bf16.msra.mxu1 %v2163_v8  ;;  %1081 = vmatpush1.bf16.msra.mxu0 %v2166_v10  ;;  %v2210_v8 = vld [vmem:[#allocation4 + $0x1ac] ss:$16 sps:$4 sm:$0xff]  }
  0x7e   :  { %1091 = vmatprep.subr.bf16.mxu1 %v2171_v11  ;;  %v2213_v10 = vld [vmem:[#allocation4 + $0x1cc] ss:$16 sps:$4 sm:$0xff]   ;;  %v2211_v11 = vld [vmem:[#allocation4 + $0x1c8] ss:$16 sps:$4 sm:$0xff]  }
 0x113   :  { %v181_v23 = vpop.f32.mrb[0].mxu0  ;;  %v222_v24 = vpop.f32.mrb[0].mxu1 }
 0x114   :  { %v182_v25 = vadd.f32 %v181_v23, %v86_v19  ;;  %v223_v26 = vadd.f32 %v222_v24, %v94_v20  ;;  %v183_v27 = vpop.f32.mrb[1].mxu0  ;;  %v224_v28 = vpop.f32.mrb[1].mxu1  ;;  %v2219_v19 = vld [vmem:[#allocation4 + $0x20c] ss:$16 sps:$4 sm:$0xff]   ;;  %v2217_v20 = vld [vmem:[#allocation4 + $0x208] ss:$16 sps:$4 sm:$0xff]  }
 0x115   :  { %v184_v29 = vadd.f32 %v183_v27, %v90_v21  ;;  %v225_v30 = vadd.f32 %v224_v28, %v98_v22  ;;  %v185_v31 = vpop.f32.mrb[2].mxu0  ;;  %v226_v32 = vpop.f32.mrb[2].mxu1  ;;  %v2222_v21 = vld [vmem:[#allocation4 + $0x22c] ss:$16 sps:$4 sm:$0xff]   ;;  %v2220_v22 = vld [vmem:[#allocation4 + $0x228] ss:$16 sps:$4 sm:$0xff]  }
 0x116   :  { %v229_v33 = vmul.f32 0.2, %v182_v25  ;;  %v231_v34 = vmul.f32 0.2, %v223_v26  ;;  %v186_v35 = vpop.f32.mrb[3].mxu0  ;;  %v227_v36 = vpop.f32.mrb[3].mxu1 }
 0x117   :  { %v230_v37 = vmul.f32 0.2, %v184_v29  ;;  %v232_v38 = vmul.f32 0.2, %v225_v30  ;;  %v2225_v23 = vld [vmem:[#allocation4 + $0x24c] ss:$16 sps:$4 sm:$0xff]  }
 0x118   :  { %v233_v39 = vmax.f32 %v182_v25, %v229_v33  ;;  %v235_v40 = vmax.f32 %v223_v26, %v231_v34  ;;  %v2223_v24 = vld [vmem:[#allocation4 + $0x248] ss:$16 sps:$4 sm:$0xff]   ;;  %v2228_v25 = vld [vmem:[#allocation4 + $0x26c] ss:$16 sps:$4 sm:$0xff]  }
 0x119   :  { %v234_v41 = vmax.f32 %v184_v29, %v230_v37  ;;  %v236_v42 = vmax.f32 %v225_v30, %v232_v38  ;;  %v2226_v26 = vld [vmem:[#allocation4 + $0x268] ss:$16 sps:$4 sm:$0xff]   ;;  %v2231_v27 = vld [vmem:[#allocation4 + $0x28c] ss:$16 sps:$4 sm:$0xff]  }
 0x11a   :  { %v2564_v43 = vpack.c.bf16 %v235_v40, %v235_v40  ;;  %v2568_v47 = vpack.c.bf16 %v233_v39, %v233_v39  ;;  %v2229_v28 = vld [vmem:[#allocation4 + $0x288] ss:$16 sps:$4 sm:$0xff]   ;;  %v2234_v29 = vld [vmem:[#allocation4 + $0x2ac] ss:$16 sps:$4 sm:$0xff]  }
 0x11b   :  { %v238_v44 = vpack.c.bf16 %v234_v41, %v234_v41  ;;  %v2566_v45 = vpack.c.bf16 %v236_v42, %v236_v42  ;;  %v2232_v30 = vld [vmem:[#allocation4 + $0x2a8] ss:$16 sps:$4 sm:$0xff]   ;;  %v2237_v31 = vld [vmem:[#allocation4 + $0x2cc] ss:$16 sps:$4 sm:$0xff]  }
 0x11c   :  { %v2235_v32 = vld [vmem:[#allocation4 + $0x2c8] ss:$16 sps:$4 sm:$0xff]   ;;  %v2240_v33 = vld [vmem:[#allocation4 + $0x2ec] ss:$16 sps:$4 sm:$0xff]  }
 0x11d   :  { %1041 = vmatprep.mubr.bf16.mxu1 %v238_v44  ;;  %1082 = vmatprep.mubr.bf16.mxu0 %v2566_v45  ;;  %v2238_v34 = vld [vmem:[#allocation4 + $0x2e8] ss:$16 sps:$4 sm:$0xff]   ;;  %v2243_v35 = vld [vmem:[#allocation4 + $0x30c] ss:$16 sps:$4 sm:$0xff]  }
 0x11e   :  { %1042 = vmatmul.mubr.bf16.vlgmr.msra.gmra.mrb[4].mxu1 %v2568_v47  ;;  %1083 = vmatmul.mubr.bf16.vlgmr.msra.gmra.mrb[4].mxu0 %v2564_v43  ;;  %v2241_v36 = vld [vmem:[#allocation4 + $0x308] ss:$16 sps:$4 sm:$0xff]   ;;  %v2246_v37 = vld [vmem:[#allocation4 + $0x32c] ss:$16 sps:$4 sm:$0xff]  }
 0x11f   :  { %1092 = vmatpush1.bf16.msra.mxu1 %v2169_v46  ;;  %1123 = vmatprep.mubr.bf16.mxu1 %v238_v44  ;;  %v2244_v38 = vld [vmem:[#allocation4 + $0x328] ss:$16 sps:$4 sm:$0xff]   ;;  %v2249_v39 = vld [vmem:[#allocation4 + $0x34c] ss:$16 sps:$4 sm:$0xff]  }
 0x120   :  { %1093 = vmatprep.subr.bf16.mxu1 %v2174_v48  ;;  %v2247_v40 = vld [vmem:[#allocation4 + $0x348] ss:$16 sps:$4 sm:$0xff]   ;;  %v2252_v41 = vld [vmem:[#allocation4 + $0x36c] ss:$16 sps:$4 sm:$0xff]  }
 0x121   :  { %v2250_v42 = vld [vmem:[#allocation4 + $0x368] ss:$16 sps:$4 sm:$0xff]   ;;  %v2255_v44 = vld [vmem:[#allocation4 + $0x38c] ss:$16 sps:$4 sm:$0xff]  }
 0x122   :  { %v2258_v46 = vld [vmem:[#allocation4 + $0x3ac] ss:$16 sps:$4 sm:$0xff]  }
 0x123   :  { %1094 = vmatpush1.bf16.msra.mxu1 %v2172_v49  ;;  %v2261_v48 = vld [vmem:[#allocation4 + $0x3cc] ss:$16 sps:$4 sm:$0xff]   ;;  %v2259_v49 = vld [vmem:[#allocation4 + $0x3c8] ss:$16 sps:$4 sm:$0xff]  }
 0x124   :  { %1095 = vmatprep.subr.bf16.mxu1 %v2177_v50  ;;  %v2264_v50 = vld [vmem:[#allocation4 + $0x3ec] ss:$16 sps:$4 sm:$0xff]  }
 0x127   :  { %1096 = vmatpush1.bf16.msra.mxu1 %v2175_v51  ;;  %v2262_v51 = vld [vmem:[#allocation4 + $0x3e8] ss:$16 sps:$4 sm:$0xff]  }
 0x128   :  { %1097 = vmatprep.subr.bf16.mxu1 %v2180_v52 }
 0x12b   :  { %1098 = vmatpush1.bf16.msra.mxu1 %v2178_v53 }
 0x12c   :  { %1099 = vmatprep.subr.bf16.mxu1 %v2183_v54 }
 0x12f   :  { %1100 = vmatpush1.bf16.msra.mxu1 %v2181_v55 }
 0x130   :  { %1101 = vmatprep.subr.bf16.mxu1 %v2186_v56 }
 0x133   :  { %1102 = vmatpush1.bf16.msra.mxu1 %v2184_v57 }
 0x134   :  { %1103 = vmatprep.subr.bf16.mxu1 %v2189_v58 }
 0x137   :  { %1104 = vmatpush1.bf16.msra.mxu1 %v2187_v59 }
 0x138   :  { %1105 = vmatprep.subr.bf16.mxu1 %v2192_v60 }
 0x13b   :  { %1106 = vmatpush1.bf16.msra.mxu1 %v2190_v61 }
 0x13c   :  { %1107 = vmatprep.subr.bf16.mxu1 %v2195_v62 }
 0x13f   :  { %1108 = vmatpush1.bf16.msra.mxu1 %v2193_v63 }
 0x140   :  { %1109 = vmatprep.subr.bf16.mxu1 %v2198_v0 }
 0x143   :  { %1110 = vmatpush1.bf16.msra.mxu1 %v2196_v1  ;;  %v2267_v1 = vld [vmem:[#allocation6 + $0x4] ss:$8 sps:$4 sm:$0xff]  }
 0x144   :  { %1111 = vmatprep.subr.bf16.mxu1 %v2201_v2  ;;  %1746 = vmatprep.subr.bf16.mxu0 %v2267_v1  ;;  %v2298_v1 = vld [vmem:[#allocation6 + $0xb0] ss:$8 sps:$4 sm:$0xff]  }
 0x147   :  { %1112 = vmatpush1.bf16.msra.mxu1 %v2199_v3  ;;  %v2265_v3 = vld [vmem:[#allocation6] ss:$8 sps:$4 sm:$0xff]  }
 0x148   :  { %1113 = vmatprep.subr.bf16.mxu1 %v2204_v4  ;;  %1747 = vmatpush1.bf16.msra.mxu0 %v2265_v3  ;;  %v2303_v3 = vld [vmem:[#allocation6 + $0xc4] ss:$8 sps:$4 sm:$0xff]  }
 0x14b   :  { %1114 = vmatpush1.bf16.msra.mxu1 %v2202_v5 }
 0x14c   :  { %1115 = vmatprep.subr.bf16.mxu1 %v2207_v6 }
 0x14f   :  { %1116 = vmatpush1.bf16.msra.mxu1 %v2205_v7  ;;  %v2270_v7 = vld [vmem:[#allocation6 + $0x14] ss:$8 sps:$4 sm:$0xff]  }
 0x150   :  { %1117 = vmatprep.subr.bf16.mxu1 %v2210_v8  ;;  %1748 = vmatprep.subr.bf16.mxu0 %v2270_v7  ;;  %v2309_v7 = vld [vmem:[#allocation6 + $0xe4] ss:$8 sps:$4 sm:$0xff]  }
 0x153   :  { %1118 = vmatpush1.bf16.msra.mxu1 %v2208_v9  ;;  %v2268_v9 = vld [vmem:[#allocation6 + $0x10] ss:$8 sps:$4 sm:$0xff]  }
 0x154   :  { %1119 = vmatprep.subr.bf16.mxu1 %v2213_v10  ;;  %1749 = vmatpush1.bf16.msra.mxu0 %v2268_v9  ;;  %v2312_v9 = vld [vmem:[#allocation6 + $0xf4] ss:$8 sps:$4 sm:$0xff]  }
 0x157   :  { %1120 = vmatpush1.bf16.msra.mxu1 %v2211_v11 }
 0x158   :  { %1121 = vmatprep.subr.bf16.mxu1 %v2216_v12 }
 0x15b   :  { %1122 = vmatpush1.bf16.msra.mxu1 %v2214_v16  ;;  %v2273_v16 = vld [vmem:[#allocation6 + $0x24] ss:$8 sps:$4 sm:$0xff]  }
 0x15c   :  { %1132 = vmatprep.subr.bf16.mxu1 %v2219_v19  ;;  %1750 = vmatprep.subr.bf16.mxu0 %v2273_v16 }
 0x15e   :  { %1124 = vmatmul.mubr.bf16.vlgmr.msra.gmra.mrb[8].mxu1 %v2568_v47  ;;  %v2256_v47 = vld [vmem:[#allocation4 + $0x3a8] ss:$16 sps:$4 sm:$0xff]  }
 0x15f   :  { %1133 = vmatpush1.bf16.msra.mxu1 %v2217_v20  ;;  %1164 = vmatprep.mubr.bf16.mxu1 %v2566_v45  ;;  %v2253_v45 = vld [vmem:[#allocation4 + $0x388] ss:$16 sps:$4 sm:$0xff]  }
 0x160   :  { %1134 = vmatprep.subr.bf16.mxu1 %v2222_v21  ;;  %v2271_v20 = vld [vmem:[#allocation6 + $0x20] ss:$8 sps:$4 sm:$0xff]  }
 0x161   :  { %1751 = vmatpush1.bf16.msra.mxu0 %v2271_v20 }
 0x163   :  { %1135 = vmatpush1.bf16.msra.mxu1 %v2220_v22 }
 0x164   :  { %1136 = vmatprep.subr.bf16.mxu1 %v2225_v23 }
 0x167   :  { %1137 = vmatpush1.bf16.msra.mxu1 %v2223_v24  ;;  %v2276_v24 = vld [vmem:[#allocation6 + $0x34] ss:$8 sps:$4 sm:$0xff]  }
 0x168   :  { %1138 = vmatprep.subr.bf16.mxu1 %v2228_v25  ;;  %1752 = vmatprep.subr.bf16.mxu0 %v2276_v24 }
 0x16b   :  { %1139 = vmatpush1.bf16.msra.mxu1 %v2226_v26  ;;  %v2274_v26 = vld [vmem:[#allocation6 + $0x30] ss:$8 sps:$4 sm:$0xff]  }
 0x16c   :  { %1140 = vmatprep.subr.bf16.mxu1 %v2231_v27  ;;  %1753 = vmatpush1.bf16.msra.mxu0 %v2274_v26 }
 0x16f   :  { %1141 = vmatpush1.bf16.msra.mxu1 %v2229_v28 }
 0x170   :  { %1142 = vmatprep.subr.bf16.mxu1 %v2234_v29 }
 0x173   :  { %1143 = vmatpush1.bf16.msra.mxu1 %v2232_v30 }
 0x174   :  { %1144 = vmatprep.subr.bf16.mxu1 %v2237_v31  ;;  %v2279_v31 = vld [vmem:[#allocation6 + $0x44] ss:$8 sps:$4 sm:$0xff]  }
 0x175   :  { %1754 = vmatprep.subr.bf16.mxu0 %v2279_v31 }
 0x177   :  { %1145 = vmatpush1.bf16.msra.mxu1 %v2235_v32 }
 0x178   :  { %1146 = vmatprep.subr.bf16.mxu1 %v2240_v33  ;;  %v2277_v33 = vld [vmem:[#allocation6 + $0x40] ss:$8 sps:$4 sm:$0xff]  }
 0x179   :  { %1755 = vmatpush1.bf16.msra.mxu0 %v2277_v33 }
 0x17b   :  { %1147 = vmatpush1.bf16.msra.mxu1 %v2238_v34 }
 0x17c   :  { %1148 = vmatprep.subr.bf16.mxu1 %v2243_v35 }
 0x17f   :  { %1149 = vmatpush1.bf16.msra.mxu1 %v2241_v36 }
 0x180   :  { %1150 = vmatprep.subr.bf16.mxu1 %v2246_v37  ;;  %v2282_v37 = vld [vmem:[#allocation6 + $0x54] ss:$8 sps:$4 sm:$0xff]  }
 0x181   :  { %1756 = vmatprep.subr.bf16.mxu0 %v2282_v37 }
 0x183   :  { %1151 = vmatpush1.bf16.msra.mxu1 %v2244_v38 }
 0x184   :  { %1152 = vmatprep.subr.bf16.mxu1 %v2249_v39  ;;  %v2280_v39 = vld [vmem:[#allocation6 + $0x50] ss:$8 sps:$4 sm:$0xff]  }
 0x185   :  { %1757 = vmatpush1.bf16.msra.mxu0 %v2280_v39 }
 0x187   :  { %1153 = vmatpush1.bf16.msra.mxu1 %v2247_v40 }
 0x188   :  { %1154 = vmatprep.subr.bf16.mxu1 %v2252_v41 }
 0x18b   :  { %1155 = vmatpush1.bf16.msra.mxu1 %v2250_v42 }
 0x18c   :  { %1156 = vmatprep.subr.bf16.mxu1 %v2255_v44  ;;  %v2285_v44 = vld [vmem:[#allocation6 + $0x64] ss:$8 sps:$4 sm:$0xff]  }
 0x18d   :  { %1758 = vmatprep.subr.bf16.mxu0 %v2285_v44 }
 0x18f   :  { %1157 = vmatpush1.bf16.msra.mxu1 %v2253_v45 }
 0x190   :  { %1158 = vmatprep.subr.bf16.mxu1 %v2258_v46  ;;  %v2283_v46 = vld [vmem:[#allocation6 + $0x60] ss:$8 sps:$4 sm:$0xff]  }
 0x191   :  { %1759 = vmatpush1.bf16.msra.mxu0 %v2283_v46 }
 0x193   :  { %1159 = vmatpush1.bf16.msra.mxu1 %v2256_v47 }
 0x194   :  { %1160 = vmatprep.subr.bf16.mxu1 %v2261_v48 }
 0x197   :  { %1161 = vmatpush1.bf16.msra.mxu1 %v2259_v49 }
 0x198   :  { %1162 = vmatprep.subr.bf16.mxu1 %v2264_v50  ;;  %v2288_v50 = vld [vmem:[#allocation6 + $0x74] ss:$8 sps:$4 sm:$0xff]  }
 0x199   :  { %1760 = vmatprep.subr.bf16.mxu0 %v2288_v50 }
 0x19b   :  { %1163 = vmatpush1.bf16.msra.mxu1 %v2262_v51 }
 0x19e   :  { %1165 = vmatmul.mubr.bf16.vlgmr.msra.gmra.mrb[8].mxu1 %v2564_v43 }
 0x1f1   :  { %v1043_v52 = vpop.f32.mrb[4].mxu1  ;;  %v1084_v53 = vpop.f32.mrb[4].mxu0 }
 0x1f2   :  { %v1085_v54 = vadd.f32 %v1084_v53, %v1043_v52  ;;  %v1045_v55 = vpop.f32.mrb[5].mxu1  ;;  %v1086_v56 = vpop.f32.mrb[5].mxu0  ;;  %v2286_v52 = vld [vmem:[#allocation6 + $0x70] ss:$8 sps:$4 sm:$0xff]  }
 0x1f3   :  { %v1087_v57 = vadd.f32 %v1086_v56, %v1045_v55  ;;  %v1047_v58 = vpop.f32.mrb[6].mxu1  ;;  %v1088_v59 = vpop.f32.mrb[6].mxu0  ;;  %1761 = vmatpush1.bf16.msra.mxu0 %v2286_v52  ;;  %v2291_v56 = vld [vmem:[#allocation6 + $0x84] ss:$8 sps:$4 sm:$0xff]  }
 0x1f4   :  { %v1176_v60 = vsel %vm1175_vm1, %v1085_v54, 0.0  ;;  %v1048_v61 = vpop.f32.mrb[7].mxu1  ;;  %v1089_v62 = vpop.f32.mrb[7].mxu0  ;;  %v2289_v58 = vld [vmem:[#allocation6 + $0x80] ss:$8 sps:$4 sm:$0xff]   ;;  %1762 = vmatprep.subr.bf16.mxu0 %v2291_v56 }
 0x1f5   :  { %v1180_v63 = vrot.slane %v1176_v60, 4  ;;  %v1177_v0 = vsel %vm1175_vm1, %v1087_v57, 0.0  ;;  %v2294_v59 = vld [vmem:[#allocation6 + $0x94] ss:$8 sps:$4 sm:$0xff]   ;;  %v2297_v61 = vld [vmem:[#allocation6 + $0xa4] ss:$8 sps:$4 sm:$0xff]  }
 0x1f6   :  { %v1186_v43 = vrot.slane %v1177_v0, 4  ;;  %v2295_v62 = vld [vmem:[#allocation6 + $0xa0] ss:$8 sps:$4 sm:$0xff]  }
 0x1f7   :  { %v1181_v2 = vadd.f32 %v1180_v63, %v1176_v60  ;;  %1763 = vmatpush1.bf16.msra.mxu0 %v2289_v58  ;;  %v2292_v60 = vld [vmem:[#allocation6 + $0x90] ss:$8 sps:$4 sm:$0xff]  }
 0x1f8   :  { %v1187_v4 = vadd.f32 %v1186_v43, %v1177_v0  ;;  %1764 = vmatprep.subr.bf16.mxu0 %v2294_v59  ;;  %v2300_v0 = vld [vmem:[#allocation6 + $0xb4] ss:$8 sps:$4 sm:$0xff]  }
 0x1f9   :  { %v1182_v5 = vrot.slane %v1181_v2, 2 }
 0x1fa   :  { %v1188_v6 = vrot.slane %v1187_v4, 2 }
 0x1fb   :  { %v1183_v8 = vadd.f32 %v1182_v5, %v1181_v2  ;;  %1765 = vmatpush1.bf16.msra.mxu0 %v2292_v60  ;;  %v2306_v5 = vld [vmem:[#allocation6 + $0xd4] ss:$8 sps:$4 sm:$0xff]  }
 0x1fc   :  { %v1189_v10 = vadd.f32 %v1188_v6, %v1187_v4  ;;  %1766 = vmatprep.subr.bf16.mxu0 %v2297_v61  ;;  %v2301_v4 = vld [vmem:[#allocation6 + $0xc0] ss:$8 sps:$4 sm:$0xff]   ;;  %v2304_v6 = vld [vmem:[#allocation6 + $0xd0] ss:$8 sps:$4 sm:$0xff]  }
 0x1fd   :  { %v1184_v11 = vrot.slane %v1183_v8, 1 }
 0x1fe   :  { %v1190_v12 = vrot.slane %v1189_v10, 1 }
 0x1ff   :  { %v1185_v19 = vadd.f32 %v1184_v11, %v1183_v8  ;;  %1767 = vmatpush1.bf16.msra.mxu0 %v2295_v62  ;;  %v2307_v8 = vld [vmem:[#allocation6 + $0xe0] ss:$8 sps:$4 sm:$0xff]   ;;  %v2315_v11 = vld [vmem:[#allocation6 + $0x104] ss:$8 sps:$4 sm:$0xff]   ;;  %v2451_v62 = vmov 1966171168  }
 0x200   :  { %v1191_v21 = vadd.f32 %v1190_v12, %v1189_v10  ;;  %1768 = vmatprep.subr.bf16.mxu0 %v2300_v0  ;;  %v2310_v10 = vld [vmem:[#allocation6 + $0xf0] ss:$8 sps:$4 sm:$0xff]   ;;  %v1264_v0 = vunpack.c.l.s4 %v2451_v62  ;;  %v2349_v62 = vld [vmem:[#allocation6 + $0x1c0] ss:$8 sps:$4 sm:$0xff]  }
 0x201   :  { %v1204_v22 = vmul.f32 0.5, %v1185_v19 }
 0x202   :  { %v1205_v23 = vmul.f32 0.5, %v1191_v21 }
 0x203   :  { %v2581_v25 = vsub.f32 %v1085_v54, %v1204_v22  ;;  %1769 = vmatpush1.bf16.msra.mxu0 %v2298_v1  ;;  %v1265_v1 = vunpack.c.0.s8 %v1264_v0 }
 0x204   :  { %v2583_v27 = vsub.f32 %v1087_v57, %v1205_v23  ;;  %1770 = vmatprep.subr.bf16.mxu0 %v2303_v3 }
 0x205   :  { %v1212_v28 = vsel %vm1175_vm1, %v2581_v25, 0.0 }
 0x206   :  { %v1216_v29 = vmul.f32 %v1212_v28, %v1212_v28  ;;  %v1213_v30 = vsel %vm1175_vm1, %v2583_v27, 0.0 }
 0x207   :  { %v1217_v32 = vmul.f32 %v1213_v30, %v1213_v30  ;;  %1771 = vmatpush1.bf16.msra.mxu0 %v2301_v4  ;;  %v1268_v4 = vsub.s32 %v1265_v1, %v2543_v13  ;;  %v2354_v1 = vld [vmem:[#allocation6 + $0x1d4] ss:$8 sps:$4 sm:$0xff]  }
 0x208   :  { %v1220_v34 = vrot.slane %v1216_v29, 4  ;;  %1772 = vmatprep.subr.bf16.mxu0 %v2306_v5 }
 0x209   :  { %v1226_v35 = vrot.slane %v1217_v32, 4 }
 0x20a   :  { %v1221_v36 = vadd.f32 %v1220_v34, %v1216_v29 }
 0x20b   :  { %v1227_v38 = vadd.f32 %v1226_v35, %v1217_v32  ;;  %1773 = vmatpush1.bf16.msra.mxu0 %v2304_v6 }
 0x20c   :  { %v1222_v40 = vrot.slane %v1221_v36, 2  ;;  %1774 = vmatprep.subr.bf16.mxu0 %v2309_v7 }
 0x20d   :  { %v1228_v41 = vrot.slane %v1227_v38, 2 }
 0x20e   :  { %v1223_v42 = vadd.f32 %v1222_v40, %v1221_v36 }
 0x20f   :  { %v1229_v45 = vadd.f32 %v1228_v41, %v1227_v38  ;;  %1775 = vmatpush1.bf16.msra.mxu0 %v2307_v8 }
 0x210   :  { %v1224_v47 = vrot.slane %v1223_v42, 1  ;;  %1776 = vmatprep.subr.bf16.mxu0 %v2312_v9 }
 0x211   :  { %v1230_v48 = vrot.slane %v1229_v45, 1 }
 0x212   :  { %v1225_v49 = vadd.f32 %v1224_v47, %v1223_v42 }
 0x213   :  { %v1231_v51 = vadd.f32 %v1230_v48, %v1229_v45  ;;  %1777 = vmatpush1.bf16.msra.mxu0 %v2310_v10  ;;  %v1256_v10 = vld [vmem:[%s2649_s4] sm:$0xf] }
 0x214   :  { %v1244_v53 = vmul.f32 0.5, %v1225_v49  ;;  %1787 = vmatprep.subr.bf16.mxu0 %v2315_v11  ;;  %v2615_v11 = vld [vmem:[%s2650_s5] sm:$0xf] }
 0x215   :  { %v1245_v54 = vmul.f32 0.5, %v1231_v51  ;;  %v1329_v13 = vrot.slane %v2615_v11, %v2558_v18  ;;  %v1325_v0 = vrot.slane %v2615_v11, %v2549_v15 }
 0x216   :  { %v1248_v55 = vadd.f32 1e-05, %v1244_v53 }
 0x217   :  { %v1249_v57 = vadd.f32 1e-05, %v1245_v54 }
 0x218   :  { %2361 = vrsqrt.f32 %v1248_v55 }
 0x219   :  { %2363 = vrsqrt.f32 %v1249_v57 }
 0x222   :  { %v2591_v63 = vpop.eup %2361 }
 0x223   :  { %v2593_v43 = vpop.eup %2363 }
 0x224   :  { %v1261_v2 = vcombine.low %v2591_v63, %v2593_v43  ;;  %v1321_v63 = vrot.slane %v2615_v11, %v2555_v17  ;;  %v1317_v43 = vrot.slane %v2615_v11, %v2546_v14 }
 0x226   :  { %v1269_v7 = vrot.slane %v1261_v2, %v1268_v4 }
 0x271   :  { %v1166_v12 = vpop.f32.mrb[8].mxu1 }
 0x272   :  { %v1178_v16 = vsel %vm1175_vm1, %v1166_v12, 0.0  ;;  %v1168_v19 = vpop.f32.mrb[9].mxu1 }
 0x273   :  { %v1192_v20 = vrot.slane %v1178_v16, 4  ;;  %v1179_v21 = vsel %vm1175_vm1, %v1168_v19, 0.0  ;;  %v1170_v22 = vpop.f32.mrb[10].mxu1 }
 0x274   :  { %v1198_v23 = vrot.slane %v1179_v21, 4  ;;  %v1171_v24 = vpop.f32.mrb[11].mxu1 }
 0x275   :  { %v1193_v26 = vadd.f32 %v1192_v20, %v1178_v16 }
 0x276   :  { %v1199_v28 = vadd.f32 %v1198_v23, %v1179_v21 }
 0x277   :  { %v1194_v29 = vrot.slane %v1193_v26, 2 }
 0x278   :  { %v1200_v30 = vrot.slane %v1199_v28, 2 }
 0x279   :  { %v1195_v31 = vadd.f32 %v1194_v29, %v1193_v26 }
 0x27a   :  { %v1201_v32 = vadd.f32 %v1200_v30, %v1199_v28 }
 0x27b   :  { %v1196_v33 = vrot.slane %v1195_v31, 1 }
 0x27c   :  { %v1202_v34 = vrot.slane %v1201_v32, 1 }
 0x27d   :  { %v1197_v35 = vadd.f32 %v1196_v33, %v1195_v31 }
 0x27e   :  { %v1203_v36 = vadd.f32 %v1202_v34, %v1201_v32 }
 0x27f   :  { %v1206_v37 = vmul.f32 0.5, %v1197_v35 }
 0x280   :  { %v1207_v38 = vmul.f32 0.5, %v1203_v36 }
 0x281   :  { %v1210_v39 = vsub.f32 %v1166_v12, %v1206_v37  ;;  %v2313_v37 = vld [vmem:[#allocation6 + $0x100] ss:$8 sps:$4 sm:$0xff]  }
 0x282   :  { %v1211_v40 = vsub.f32 %v1168_v19, %v1207_v38 }
 0x283   :  { %v1214_v41 = vsel %vm1175_vm1, %v1210_v39, 0.0 }
 0x284   :  { %v1218_v42 = vmul.f32 %v1214_v41, %v1214_v41  ;;  %v1215_v44 = vsel %vm1175_vm1, %v1211_v40, 0.0  ;;  %v2318_v41 = vld [vmem:[#allocation6 + $0x114] ss:$8 sps:$4 sm:$0xff]  }
 0x285   :  { %v1219_v45 = vmul.f32 %v1215_v44, %v1215_v44  ;;  %v2322_v44 = vld [vmem:[#allocation6 + $0x130] ss:$8 sps:$4 sm:$0xff]  }
 0x286   :  { %v1232_v46 = vrot.slane %v1218_v42, 4 }
 0x287   :  { %v1238_v47 = vrot.slane %v1219_v45, 4 }
 0x288   :  { %v1233_v48 = vadd.f32 %v1232_v46, %v1218_v42  ;;  %v2324_v42 = vld [vmem:[#allocation6 + $0x134] ss:$8 sps:$4 sm:$0xff]   ;;  %v2325_v46 = vld [vmem:[#allocation6 + $0x140] ss:$8 sps:$4 sm:$0xff]  }
 0x289   :  { %v1239_v49 = vadd.f32 %v1238_v47, %v1219_v45  ;;  %v2327_v45 = vld [vmem:[#allocation6 + $0x144] ss:$8 sps:$4 sm:$0xff]   ;;  %v2330_v47 = vld [vmem:[#allocation6 + $0x154] ss:$8 sps:$4 sm:$0xff]  }
 0x28a   :  { %v1234_v50 = vrot.slane %v1233_v48, 2 }
 0x28b   :  { %v1240_v51 = vrot.slane %v1239_v49, 2 }
 0x28c   :  { %v1235_v52 = vadd.f32 %v1234_v50, %v1233_v48  ;;  %v2328_v48 = vld [vmem:[#allocation6 + $0x150] ss:$8 sps:$4 sm:$0xff]   ;;  %v2331_v50 = vld [vmem:[#allocation6 + $0x160] ss:$8 sps:$4 sm:$0xff]  }
 0x28d   :  { %v1241_v53 = vadd.f32 %v1240_v51, %v1239_v49  ;;  %v2333_v49 = vld [vmem:[#allocation6 + $0x164] ss:$8 sps:$4 sm:$0xff]   ;;  %v2336_v51 = vld [vmem:[#allocation6 + $0x174] ss:$8 sps:$4 sm:$0xff]  }
 0x28e   :  { %v1236_v54 = vrot.slane %v1235_v52, 1 }
 0x28f   :  { %v1242_v55 = vrot.slane %v1241_v53, 1 }
 0x290   :  { %v1237_v56 = vadd.f32 %v1236_v54, %v1235_v52  ;;  %v2334_v52 = vld [vmem:[#allocation6 + $0x170] ss:$8 sps:$4 sm:$0xff]   ;;  %v2337_v54 = vld [vmem:[#allocation6 + $0x180] ss:$8 sps:$4 sm:$0xff]  }
 0x291   :  { %v1243_v57 = vadd.f32 %v1242_v55, %v1241_v53  ;;  %v2339_v53 = vld [vmem:[#allocation6 + $0x184] ss:$8 sps:$4 sm:$0xff]   ;;  %v2342_v55 = vld [vmem:[#allocation6 + $0x194] ss:$8 sps:$4 sm:$0xff]  }
 0x292   :  { %v1246_v58 = vmul.f32 0.5, %v1237_v56  ;;  %v2340_v56 = vld [vmem:[#allocation6 + $0x190] ss:$8 sps:$4 sm:$0xff]  }
 0x293   :  { %v1247_v59 = vmul.f32 0.5, %v1243_v57  ;;  %v2345_v57 = vld [vmem:[#allocation6 + $0x1a4] ss:$8 sps:$4 sm:$0xff]  }
 0x294   :  { %v1250_v60 = vadd.f32 1e-05, %v1246_v58  ;;  %v2343_v58 = vld [vmem:[#allocation6 + $0x1a0] ss:$8 sps:$4 sm:$0xff]  }
 0x295   :  { %v1251_v61 = vadd.f32 1e-05, %v1247_v59  ;;  %v2348_v59 = vld [vmem:[#allocation6 + $0x1b4] ss:$8 sps:$4 sm:$0xff]  }
 0x296   :  { %2365 = vrsqrt.f32 %v1250_v60  ;;  %v2346_v60 = vld [vmem:[#allocation6 + $0x1b0] ss:$8 sps:$4 sm:$0xff]  }
 0x297   :  { %2367 = vrsqrt.f32 %v1251_v61  ;;  %v2351_v61 = vld [vmem:[#allocation6 + $0x1c4] ss:$8 sps:$4 sm:$0xff]  }
 0x2a0   :  { %v2366_v3 = vpop.eup %2365 }
 0x2a1   :  { %v2368_v5 = vpop.eup %2367 }
 0x2a2   :  { %v1262_v6 = vcombine.low %v2366_v3, %v2368_v5  ;;  %v2352_v3 = vld [vmem:[#allocation6 + $0x1d0] ss:$8 sps:$4 sm:$0xff]  }
 0x2a4   :  { %v1276_v8 = vrot.slane %v1262_v6, %v1268_v4  ;;  %v2355_v6 = vld [vmem:[#allocation6 + $0x1e0] ss:$8 sps:$4 sm:$0xff]  }
 0x2a6   :  { %v1277_v9 = vcombine.low %v1269_v7, %v1276_v8  ;;  %v2360_v7 = vld [vmem:[#allocation6 + $0x1f4] ss:$8 sps:$4 sm:$0xff]  }
 0x2a8   :  { %v1284_v12 = vrot.slane %v1277_v9, %v1268_v4  ;;  %v2357_v4 = vld [vmem:[#allocation6 + $0x1e4] ss:$8 sps:$4 sm:$0xff]   ;;  %v2358_v9 = vld [vmem:[#allocation6 + $0x1f0] ss:$8 sps:$4 sm:$0xff]  }
 0x2aa   :  { %v1286_v16 = vmul.f32 %v1284_v12, %v1256_v10 }
 0x2ac   :  { %v1303_v2 = vrot.slane %v1286_v16, %v2558_v18  ;;  %v1295_v19 = vrot.slane %v1286_v16, %v2555_v17  ;;  %v1291_v20 = vrot.slane %v1286_v16, %v2546_v14  ;;  %v1299_v21 = vrot.slane %v1286_v16, %v2549_v15  ;;  %v1414_v15 = vld [vmem:[%s2652_s7] sm:$0x3] }
 0x2ad   :  { %v1419_v11 = vrot.slane %v1414_v15, %v2546_v14  ;;  %v1423_v16 = vrot.slane %v1414_v15, %v2555_v17 }
 0x2ae   :  { %v1311_v22 = vmul.f32 %v1303_v2, %v1211_v40  ;;  %v1309_v23 = vmul.f32 %v1295_v19, %v2583_v27  ;;  %v1308_v24 = vmul.f32 %v1291_v20, %v2581_v25  ;;  %v2629_v26 = vmul.f32 %v1299_v21, %v1210_v39  ;;  %v2316_v25 = vld [vmem:[#allocation6 + $0x110] ss:$8 sps:$4 sm:$0xff]   ;;  %v2321_v27 = vld [vmem:[#allocation6 + $0x124] ss:$8 sps:$4 sm:$0xff]   ;;  %v2319_v39 = vld [vmem:[#allocation6 + $0x120] ss:$8 sps:$4 sm:$0xff]  }
 0x2b0   :  { %v1337_v28 = vadd.f32 %v1329_v13, %v1311_v22  ;;  %v1335_v29 = vadd.f32 %v1321_v63, %v1309_v23  ;;  %v1334_v30 = vadd.f32 %v1317_v43, %v1308_v24  ;;  %v1336_v5 = vadd.f32 %v1325_v0, %v2629_v26 }
 0x2b2   :  { %v1339_v31 = vmul.f32 0.2, %v1335_v29  ;;  %v1338_v32 = vmul.f32 0.2, %v1334_v30  ;;  %v1341_v33 = vmul.f32 0.2, %v1337_v28 }
 0x2b3   :  { %v1340_v8 = vmul.f32 0.2, %v1336_v5 }
 0x2b4   :  { %v1343_v18 = vmax.f32 %v1335_v29, %v1339_v31  ;;  %v1342_v34 = vmax.f32 %v1334_v30, %v1338_v32  ;;  %v1345_v35 = vmax.f32 %v1337_v28, %v1341_v33 }
 0x2b5   :  { %v1344_v10 = vmax.f32 %v1336_v5, %v1340_v8 }
 0x2b6   :  { %v1347_v36 = vpack.c.bf16 %v1343_v18, %v1343_v18  ;;  %v1346_v38 = vpack.c.bf16 %v1342_v34, %v1342_v34  ;;  %v1349_v40 = vpack.c.bf16 %v1345_v35, %v1345_v35 }
 0x2b7   :  { %v1348_v12 = vpack.c.bf16 %v1344_v10, %v1344_v10 }
 0x2b8   :  { %1778 = vmatprep.mubr.bf16.mxu0 %v1347_v36 }
 0x2b9   :  { %1779 = vmatmul.mubr.bf16.vlgmr.msra.gmra.mrb[8].mxu0 %v1346_v38 }
 0x2ba   :  { %1788 = vmatpush1.bf16.msra.mxu0 %v2313_v37  ;;  %1819 = vmatprep.mubr.bf16.mxu0 %v1349_v40 }
 0x2bb   :  { %1789 = vmatprep.subr.bf16.mxu0 %v2318_v41 }
 0x2be   :  { %1790 = vmatpush1.bf16.msra.mxu0 %v2316_v25 }
 0x2bf   :  { %1791 = vmatprep.subr.bf16.mxu0 %v2321_v27 }
 0x2c2   :  { %1792 = vmatpush1.bf16.msra.mxu0 %v2319_v39 }
 0x2c3   :  { %1793 = vmatprep.subr.bf16.mxu0 %v2324_v42 }
 0x2c6   :  { %1794 = vmatpush1.bf16.msra.mxu0 %v2322_v44 }
 0x2c7   :  { %1795 = vmatprep.subr.bf16.mxu0 %v2327_v45 }
 0x2ca   :  { %1796 = vmatpush1.bf16.msra.mxu0 %v2325_v46 }
 0x2cb   :  { %1797 = vmatprep.subr.bf16.mxu0 %v2330_v47 }
 0x2ce   :  { %1798 = vmatpush1.bf16.msra.mxu0 %v2328_v48 }
 0x2cf   :  { %1799 = vmatprep.subr.bf16.mxu0 %v2333_v49 }
 0x2d2   :  { %1800 = vmatpush1.bf16.msra.mxu0 %v2331_v50 }
 0x2d3   :  { %1801 = vmatprep.subr.bf16.mxu0 %v2336_v51 }
 0x2d6   :  { %1802 = vmatpush1.bf16.msra.mxu0 %v2334_v52 }
 0x2d7   :  { %1803 = vmatprep.subr.bf16.mxu0 %v2339_v53 }
 0x2da   :  { %1804 = vmatpush1.bf16.msra.mxu0 %v2337_v54 }
 0x2db   :  { %1805 = vmatprep.subr.bf16.mxu0 %v2342_v55 }
 0x2de   :  { %1806 = vmatpush1.bf16.msra.mxu0 %v2340_v56 }
 0x2df   :  { %1807 = vmatprep.subr.bf16.mxu0 %v2345_v57 }
 0x2e2   :  { %1808 = vmatpush1.bf16.msra.mxu0 %v2343_v58 }
 0x2e3   :  { %1809 = vmatprep.subr.bf16.mxu0 %v2348_v59 }
 0x2e6   :  { %1810 = vmatpush1.bf16.msra.mxu0 %v2346_v60 }
 0x2e7   :  { %1811 = vmatprep.subr.bf16.mxu0 %v2351_v61 }
 0x2ea   :  { %1812 = vmatpush1.bf16.msra.mxu0 %v2349_v62 }
 0x2eb   :  { %1813 = vmatprep.subr.bf16.mxu0 %v2354_v1 }
 0x2ee   :  { %1814 = vmatpush1.bf16.msra.mxu0 %v2352_v3 }
 0x2ef   :  { %1815 = vmatprep.subr.bf16.mxu0 %v2357_v4 }
 0x2f2   :  { %1816 = vmatpush1.bf16.msra.mxu0 %v2355_v6 }
 0x2f3   :  { %1817 = vmatprep.subr.bf16.mxu0 %v2360_v7 }
 0x2f6   :  { %1818 = vmatpush1.bf16.msra.mxu0 %v2358_v9 }
 0x2f9   :  { %1820 = vmatmul.mubr.bf16.vlgmr.msra.gmra.mrb[8].mxu0 %v1348_v12 }
 0x3cc   :  { %v1821_v13 = vpop.f32.mrb[8].mxu0 }
 0x3cd   :  { %v2042_v63 = vadd.f32 %v1821_v13, %v1419_v11  ;;  %v1823_v43 = vpop.f32.mrb[9].mxu0 }
 0x3ce   :  { %v2043_v2 = vadd.f32 %v1823_v43, %v1423_v16  ;;  %v1825_v19 = vpop.f32.mrb[10].mxu0 }
 0x3cf   :  { %2369 = vtanh.f32 %v2042_v63  ;;  %v1826_v20 = vpop.f32.mrb[11].mxu0 }
 0x3d0   :  { %2371 = vtanh.f32 %v2043_v2 }
 0x3d9   :  { %v2370_v21 = vpop.eup %2369 }
 0x3da   :  { %v2372_v22 = vpop.eup %2371  ;;  %1830 = vst [vmem:[%s2653_s8] sm:$0xff] %v2370_v21 }
 0x3db   :  { %1831 = vst [vmem:[%s2653_s8 + $0x8] sm:$0xff] %v2372_v22 }
 0x3dc   :  { %1836 = vsyncpa [#allocation3], 1 }
 0x3dd   :  { %1837 = vsyncpa [#allocation5], 1 }

</bundles_post_ra>
